<compile_context>
chip_gen: v6e
topology: v6e:2x2x1
jax: 0.10.0
libtpu: 0.0.40
codegen_flags: <defaults>
</compile_context>

<pallas_src>
import functools

import jax
import jax.numpy as jnp
import numpy as np
from jax.experimental import pallas as pl
from jax.experimental.pallas import tpu as pltpu

BN_EPS = 1e-5  # nn.BatchNorm3d default


# ---------------------------------------------------------------------------
# Pass 1: y^T = W^T @ P^T  (conv), plus per-tile per-channel sum / sum-of-squares
# ---------------------------------------------------------------------------
def _conv_stats_kernel(pt_ref, wt_ref, y_ref, sum_ref, sq_ref):
    # pt_ref : (1, K_pad, TILE_M)   transposed im2col patches (zero padded)
    # wt_ref : (Cout, K_pad)        reordered conv weight (zero padded)
    # y_ref  : (1, Cout, TILE_M)    conv output tile (lane-dense on M)
    # sum_ref: (1, 1, Cout, 1)      per-tile per-channel sum
    # sq_ref : (1, 1, Cout, 1)      per-tile per-channel sum of squares
    p = pt_ref[0]                                              # (K_pad, TILE_M)
    y = jnp.dot(wt_ref[...], p, preferred_element_type=jnp.float32)
    y_ref[0] = y
    sum_ref[0, 0] = jnp.sum(y, axis=1, keepdims=True)          # (Cout, 1)
    sq_ref[0, 0] = jnp.sum(y * y, axis=1, keepdims=True)       # (Cout, 1)


# ---------------------------------------------------------------------------
# Pass 2: BN (folded into scale/shift) + ReLU, elementwise over lane-dense tiles
# ---------------------------------------------------------------------------
def _bn_relu_kernel(y_ref, scale_ref, shift_ref, o_ref):
    # y_ref : (1, Cout, TILE_M); scale/shift: (Cout, 1); o_ref: (1, Cout, TILE_M)
    y = y_ref[0]
    o_ref[0] = jnp.maximum(y * scale_ref[...] + shift_ref[...], 0.0)


# ---------------------------------------------------------------------------
# Host-side glue
# ---------------------------------------------------------------------------
def _round_up(x, m):
    return (x + m - 1) // m * m


def _pick_tile_m(mo_pad, k_pad, bytes_budget=4 << 20):
    """Largest tile (multiple of 128) dividing mo_pad within a VMEM byte budget."""
    max_tile = max(128, (bytes_budget // (k_pad * 4)) // 128 * 128)
    for cand in (2048, 1024, 512, 256, 128):
        if cand <= max_tile and mo_pad % cand == 0:
            return cand
    return 128


def _im2col_3d_T(x, k, s, p):
    """x: (N, C, D, H, W) -> transposed patches (N, k^3*C, Do*Ho*Wo).

    Feature index is kernel-offset major, input-channel minor.
    """
    n, c, d, h, w = x.shape
    xp = jnp.pad(x, ((0, 0), (0, 0), (p, p), (p, p), (p, p)))
    do = (d + 2 * p - k) // s + 1
    ho = (h + 2 * p - k) // s + 1
    wo = (w + 2 * p - k) // s + 1
    slabs = []
    for kd in range(k):
        for kh in range(k):
            for kw in range(k):
                slab = xp[:, :,
                          kd:kd + s * do:s,
                          kh:kh + s * ho:s,
                          kw:kw + s * wo:s]                    # (N, C, Do, Ho, Wo)
                slabs.append(slab)
    pt = jnp.stack(slabs, axis=1)                              # (N, k^3, C, Do, Ho, Wo)
    pt = pt.reshape(n, k * k * k * c, do * ho * wo)            # (N, K, Mo)
    return pt, (do, ho, wo)


@functools.partial(jax.jit, static_argnames=("kernel_size", "downsample"))
def conv_block_forward(x, weight, bias, gamma, beta, *, kernel_size, downsample):
    """Forward pass of Conv_Block (Conv3d -> BatchNorm3d(train stats) -> ReLU).

    x      : (N, C_in, D, H, W) float32
    weight : (C_out, C_in, k, k, k)
    bias   : (C_out,)            (unused: exactly cancelled by BN mean subtraction)
    gamma  : (C_out,)            BN weight
    beta   : (C_out,)            BN bias
    returns: (N, C_out, Do, Ho, Wo)
    """
    del bias  # mathematically cancelled by training-mode BN mean subtraction

    n, c_in = x.shape[0], x.shape[1]
    c_out = weight.shape[0]
    k = kernel_size
    stride = 2 if downsample else 1
    pad = k // 2

    pt, (do, ho, wo) = _im2col_3d_T(x, k, stride, pad)         # (N, K, Mo)
    kdim = k * k * k * c_in
    mo = do * ho * wo

    k_pad = _round_up(kdim, 8)
    mo_pad = _round_up(mo, 128)
    tile_m = _pick_tile_m(mo_pad, k_pad)
    n_t = mo_pad // tile_m

    pt = jnp.pad(pt, ((0, 0), (0, k_pad - kdim), (0, mo_pad - mo)))

    # Weight (Cout, Cin, kd, kh, kw) -> (Cout, kd, kh, kw, Cin) -> (Cout, K_pad)
    wt = weight.transpose(0, 2, 3, 4, 1).reshape(c_out, kdim)
    wt = jnp.pad(wt, ((0, 0), (0, k_pad - kdim)))

    # ---- Pass 1: conv matmul + per-tile BN partial statistics -------------
    y, sums, sqs = pl.pallas_call(
        _conv_stats_kernel,
        out_shape=(
            jax.ShapeDtypeStruct((n, c_out, mo_pad), jnp.float32),
            jax.ShapeDtypeStruct((n, n_t, c_out, 1), jnp.float32),
            jax.ShapeDtypeStruct((n, n_t, c_out, 1), jnp.float32),
        ),
        grid=(n, n_t),
        in_specs=[
            pl.BlockSpec((1, k_pad, tile_m), lambda i, t: (i, 0, t)),
            pl.BlockSpec((c_out, k_pad), lambda i, t: (0, 0)),
        ],
        out_specs=(
            pl.BlockSpec((1, c_out, tile_m), lambda i, t: (i, 0, t)),
            pl.BlockSpec((1, 1, c_out, 1), lambda i, t: (i, t, 0, 0)),
            pl.BlockSpec((1, 1, c_out, 1), lambda i, t: (i, t, 0, 0)),
        ),
        compiler_params=pltpu.CompilerParams(
            dimension_semantics=("parallel", "parallel")),
    )(pt, wt)

    # ---- Tiny host reduction over partials -> folded BN scale/shift -------
    m_true = jnp.float32(n * mo)   # zero-padded columns contribute 0 to both sums
    tot_sum = jnp.sum(sums, axis=(0, 1))[:, 0]                 # (Cout,)
    tot_sq = jnp.sum(sqs, axis=(0, 1))[:, 0]                   # (Cout,)
    mean = tot_sum / m_true
    var = jnp.maximum(tot_sq / m_true - mean * mean, 0.0)      # biased variance
    inv = jax.lax.rsqrt(var + BN_EPS)
    scale = (gamma * inv).reshape(c_out, 1)
    shift = (beta - mean * gamma * inv).reshape(c_out, 1)

    # ---- Pass 2: y * scale + shift, ReLU (lane-dense elementwise) ----------
    out = pl.pallas_call(
        _bn_relu_kernel,
        out_shape=jax.ShapeDtypeStruct((n, c_out, mo_pad), jnp.float32),
        grid=(n, n_t),
        in_specs=[
            pl.BlockSpec((1, c_out, tile_m), lambda i, t: (i, 0, t)),
            pl.BlockSpec((c_out, 1), lambda i, t: (0, 0)),
            pl.BlockSpec((c_out, 1), lambda i, t: (0, 0)),
        ],
        out_specs=pl.BlockSpec((1, c_out, tile_m), lambda i, t: (i, 0, t)),
        compiler_params=pltpu.CompilerParams(
            dimension_semantics=("parallel", "parallel")),
    )(y, scale, shift)

    # (N, Cout, Mo_pad) -> (N, Cout, Do, Ho, Wo): slice padding, free reshape.
    return out[:, :, :mo].reshape(n, c_out, do, ho, wo)


# ---------------------------------------------------------------------------
# Pure-JAX reference
# ---------------------------------------------------------------------------
def conv_block_reference(x, weight, bias, gamma, beta, *, kernel_size, downsample):
    stride = 2 if downsample else 1
    pad = kernel_size // 2
    y = jax.lax.conv_general_dilated(
        x, weight,
        window_strides=(stride,) * 3,
        padding=[(pad, pad)] * 3,
        dimension_numbers=("NCDHW", "OIDHW", "NCDHW"),
    )
    y = y + bias.reshape(1, -1, 1, 1, 1)
    mean = jnp.mean(y, axis=(0, 2, 3, 4), keepdims=True)
    var = jnp.mean((y - mean) ** 2, axis=(0, 2, 3, 4), keepdims=True)
    y = (y - mean) * jax.lax.rsqrt(var + BN_EPS)
    y = y * gamma.reshape(1, -1, 1, 1, 1) + beta.reshape(1, -1, 1, 1, 1)
    return jnp.maximum(y, 0.0)


def _run_case(key, *, n, c_in, c_out, spatial, kernel_size, downsample):
    kx, kw, kb = jax.random.split(key, 3)
    d = h = w = spatial
    x = jax.random.normal(kx, (n, c_in, d, h, w), dtype=jnp.float32)
    fan_in = c_in * kernel_size ** 3
    bound = 1.0 / np.sqrt(fan_in)
    weight = jax.random.uniform(
        kw, (c_out, c_in, kernel_size, kernel_size, kernel_size),
        minval=-bound, maxval=bound, dtype=jnp.float32)
    bias = jax.random.uniform(kb, (c_out,), minval=-bound, maxval=bound,
                              dtype=jnp.float32)
    gamma = jnp.ones((c_out,), jnp.float32)   # BatchNorm3d default init
    beta = jnp.zeros((c_out,), jnp.float32)

    out = conv_block_forward(x, weight, bias, gamma, beta,
                             kernel_size=kernel_size, downsample=downsample)
    out = jax.block_until_ready(out)

    ref = conv_block_reference(x, weight, bias, gamma, beta,
                               kernel_size=kernel_size, downsample=downsample)
    ref = jax.block_until_ready(ref)

    assert out.shape == ref.shape, (out.shape, ref.shape)
    max_err = float(jnp.max(jnp.abs(out - ref)))
    assert max_err < 1e-3, f"max abs error too large: {max_err}"


if __name__ == "__main__":
    key = jax.random.PRNGKey(0)
    k1, k2 = jax.random.split(key)

    # Conv_Block(4, 8, kernel_size=3, downsample=True) on (2, 4, 16, 16, 16)
    _run_case(k1, n=2, c_in=4, c_out=8, spatial=16, kernel_size=3, downsample=True)
    # Conv_Block(3, 16, kernel_size=3, downsample=False) on (2, 3, 10, 10, 10)
    _run_case(k2, n=2, c_in=3, c_out=16, spatial=10, kernel_size=3, downsample=False)

    print("KERNEL_OK")
</pallas_src>

<mosaic_0001>
module attributes {stable_mosaic.version = 11 : i64} {
  func.func @_conv_stats_kernel(%arg0: i32, %arg1: i32, %arg2: memref<1x112x512xf32, #tpu.memory_space<vmem>>, %arg3: memref<8x112xf32, #tpu.memory_space<vmem>>, %arg4: memref<1x8x512xf32, #tpu.memory_space<vmem>>, %arg5: memref<1x1x8x1xf32, #tpu.memory_space<vmem>>, %arg6: memref<1x1x8x1xf32, #tpu.memory_space<vmem>>) attributes {dimension_semantics = [#tpu.dimension_semantics<parallel>, #tpu.dimension_semantics<parallel>], iteration_bounds = array<i64: 2, 1>, scalar_prefetch = 0 : i64, scratch_operands = 0 : i64, tpu.core_type = #tpu.core_type<tc>, window_params = [{transform_indices = @transform_0, window_bounds = array<i64: 1, 112, 512>}, {pipeline_mode = #tpu.pipeline_mode<synchronous>, transform_indices = @transform_1, window_bounds = array<i64: 8, 112>}, {transform_indices = @transform_2, window_bounds = array<i64: 1, 8, 512>}, {transform_indices = @transform_3, window_bounds = array<i64: 1, 1, 8, 1>}, {transform_indices = @transform_4, window_bounds = array<i64: 1, 1, 8, 1>}]} {
    %c0 = arith.constant 0 : index
    %c0_0 = arith.constant 0 : index
    %c0_1 = arith.constant 0 : index
    %0 = vector.load %arg2[%c0, %c0_0, %c0_1] : memref<1x112x512xf32, #tpu.memory_space<vmem>>, vector<1x112x512xf32>
    %1 = vector.shape_cast %0 : vector<1x112x512xf32> to vector<112x512xf32>
    %c0_2 = arith.constant 0 : index
    %c0_3 = arith.constant 0 : index
    %2 = vector.load %arg3[%c0_2, %c0_3] : memref<8x112xf32, #tpu.memory_space<vmem>>, vector<8x112xf32>
    %cst = arith.constant dense<0.000000e+00> : vector<8x512xf32>
    %3 = tpu.matmul %2, %1, %cst {dimension_numbers = #tpu.dot_dimension_numbers<[1], [0], [0], [1], [0, 0, 1, 1], [], []>} : vector<8x112xf32>, vector<112x512xf32>, vector<8x512xf32> -> vector<8x512xf32>
    %c0_4 = arith.constant 0 : index
    %c0_5 = arith.constant 0 : index
    %c0_6 = arith.constant 0 : index
    %4 = vector.load %arg4[%c0_4, %c0_5, %c0_6] : memref<1x8x512xf32, #tpu.memory_space<vmem>>, vector<1x8x512xf32>
    %5 = vector.shape_cast %4 : vector<1x8x512xf32> to vector<8x512xf32>
    %6 = vector.shape_cast %3 : vector<8x512xf32> to vector<1x8x512xf32>
    tpu.vector_store %arg4[%c0_4, %c0_5, %c0_6], %6 {strides = array<i32>} : memref<1x8x512xf32, #tpu.memory_space<vmem>>, vector<1x8x512xf32>,
    %cst_7 = arith.constant dense<0.000000e+00> : vector<8xf32>
    %7 = vector.multi_reduction <add>, %3, %cst_7 [1] : vector<8x512xf32> to vector<8xf32>
    %8 = vector.shape_cast %7 : vector<8xf32> to vector<8x1xf32>
    %c0_8 = arith.constant 0 : index
    %c0_9 = arith.constant 0 : index
    %c0_10 = arith.constant 0 : index
    %c0_11 = arith.constant 0 : index
    %9 = vector.load %arg5[%c0_8, %c0_9, %c0_10, %c0_11] : memref<1x1x8x1xf32, #tpu.memory_space<vmem>>, vector<1x1x8x1xf32>
    %10 = vector.shape_cast %9 : vector<1x1x8x1xf32> to vector<8x1xf32>
    %11 = vector.shape_cast %8 : vector<8x1xf32> to vector<1x1x8x1xf32>
    tpu.vector_store %arg5[%c0_8, %c0_9, %c0_10, %c0_11], %11 {strides = array<i32>} : memref<1x1x8x1xf32, #tpu.memory_space<vmem>>, vector<1x1x8x1xf32>,
    %12 = arith.mulf %3, %3 : vector<8x512xf32>
    %cst_12 = arith.constant dense<0.000000e+00> : vector<8xf32>
    %13 = vector.multi_reduction <add>, %12, %cst_12 [1] : vector<8x512xf32> to vector<8xf32>
    %14 = vector.shape_cast %13 : vector<8xf32> to vector<8x1xf32>
    %c0_13 = arith.constant 0 : index
    %c0_14 = arith.constant 0 : index
    %c0_15 = arith.constant 0 : index
    %c0_16 = arith.constant 0 : index
    %15 = vector.load %arg6[%c0_13, %c0_14, %c0_15, %c0_16] : memref<1x1x8x1xf32, #tpu.memory_space<vmem>>, vector<1x1x8x1xf32>
    %16 = vector.shape_cast %15 : vector<1x1x8x1xf32> to vector<8x1xf32>
    %17 = vector.shape_cast %14 : vector<8x1xf32> to vector<1x1x8x1xf32>
    tpu.vector_store %arg6[%c0_13, %c0_14, %c0_15, %c0_16], %17 {strides = array<i32>} : memref<1x1x8x1xf32, #tpu.memory_space<vmem>>, vector<1x1x8x1xf32>,
    return
  }
  func.func @transform_0(%arg0: i32, %arg1: i32) -> (i32, i32, i32) {
    %c0_i32 = arith.constant 0 : i32
    %c0_i32_0 = arith.constant 0 : i32
    return %arg0, %c0_i32, %arg1 : i32, i32, i32
  }
  func.func @transform_1(%arg0: i32, %arg1: i32) -> (i32, i32) {
    %c0_i32 = arith.constant 0 : i32
    %c0_i32_0 = arith.constant 0 : i32
    %c0_i32_1 = arith.constant 0 : i32
    return %c0_i32, %c0_i32_0 : i32, i32
  }
  func.func @transform_2(%arg0: i32, %arg1: i32) -> (i32, i32, i32) {
    %c0_i32 = arith.constant 0 : i32
    %c0_i32_0 = arith.constant 0 : i32
    return %arg0, %c0_i32, %arg1 : i32, i32, i32
  }
  func.func @transform_3(%arg0: i32, %arg1: i32) -> (i32, i32, i32, i32) {
    %c0_i32 = arith.constant 0 : i32
    %c0_i32_0 = arith.constant 0 : i32
    %c0_i32_1 = arith.constant 0 : i32
    return %arg0, %arg1, %c0_i32, %c0_i32_0 : i32, i32, i32, i32
  }
  func.func @transform_4(%arg0: i32, %arg1: i32) -> (i32, i32, i32, i32) {
    %c0_i32 = arith.constant 0 : i32
    %c0_i32_0 = arith.constant 0 : i32
    %c0_i32_1 = arith.constant 0 : i32
    return %arg0, %arg1, %c0_i32, %c0_i32_0 : i32, i32, i32, i32
  }
}

module attributes {stable_mosaic.version = 11 : i64} {
  func.func @_bn_relu_kernel(%arg0: i32, %arg1: i32, %arg2: memref<1x8x512xf32, #tpu.memory_space<vmem>>, %arg3: memref<8x1xf32, #tpu.memory_space<vmem>>, %arg4: memref<8x1xf32, #tpu.memory_space<vmem>>, %arg5: memref<1x8x512xf32, #tpu.memory_space<vmem>>) attributes {dimension_semantics = [#tpu.dimension_semantics<parallel>, #tpu.dimension_semantics<parallel>], iteration_bounds = array<i64: 2, 1>, scalar_prefetch = 0 : i64, scratch_operands = 0 : i64, tpu.core_type = #tpu.core_type<tc>, window_params = [{transform_indices = @transform_0, window_bounds = array<i64: 1, 8, 512>}, {pipeline_mode = #tpu.pipeline_mode<synchronous>, transform_indices = @transform_1, window_bounds = array<i64: 8, 1>}, {pipeline_mode = #tpu.pipeline_mode<synchronous>, transform_indices = @transform_2, window_bounds = array<i64: 8, 1>}, {transform_indices = @transform_3, window_bounds = array<i64: 1, 8, 512>}]} {
    %c0 = arith.constant 0 : index
    %c0_0 = arith.constant 0 : index
    %c0_1 = arith.constant 0 : index
    %0 = vector.load %arg2[%c0, %c0_0, %c0_1] : memref<1x8x512xf32, #tpu.memory_space<vmem>>, vector<1x8x512xf32>
    %1 = vector.shape_cast %0 : vector<1x8x512xf32> to vector<8x512xf32>
    %c0_2 = arith.constant 0 : index
    %c0_3 = arith.constant 0 : index
    %2 = vector.load %arg3[%c0_2, %c0_3] : memref<8x1xf32, #tpu.memory_space<vmem>>, vector<8x1xf32>
    %3 = vector.broadcast %2 : vector<8x1xf32> to vector<8x512xf32>
    %4 = arith.mulf %1, %3 : vector<8x512xf32>
    %c0_4 = arith.constant 0 : index
    %c0_5 = arith.constant 0 : index
    %5 = vector.load %arg4[%c0_4, %c0_5] : memref<8x1xf32, #tpu.memory_space<vmem>>, vector<8x1xf32>
    %6 = vector.broadcast %5 : vector<8x1xf32> to vector<8x512xf32>
    %7 = arith.addf %4, %6 : vector<8x512xf32>
    %cst = arith.constant 0.000000e+00 : f32
    %8 = vector.broadcast %cst : f32 to vector<8x512xf32>
    %9 = arith.maximumf %7, %8 : vector<8x512xf32>
    %c0_6 = arith.constant 0 : index
    %c0_7 = arith.constant 0 : index
    %c0_8 = arith.constant 0 : index
    %10 = vector.load %arg5[%c0_6, %c0_7, %c0_8] : memref<1x8x512xf32, #tpu.memory_space<vmem>>, vector<1x8x512xf32>
    %11 = vector.shape_cast %10 : vector<1x8x512xf32> to vector<8x512xf32>
    %12 = vector.shape_cast %9 : vector<8x512xf32> to vector<1x8x512xf32>
    tpu.vector_store %arg5[%c0_6, %c0_7, %c0_8], %12 {strides = array<i32>} : memref<1x8x512xf32, #tpu.memory_space<vmem>>, vector<1x8x512xf32>,
    return
  }
  func.func @transform_0(%arg0: i32, %arg1: i32) -> (i32, i32, i32) {
    %c0_i32 = arith.constant 0 : i32
    %c0_i32_0 = arith.constant 0 : i32
    return %arg0, %c0_i32, %arg1 : i32, i32, i32
  }
  func.func @transform_1(%arg0: i32, %arg1: i32) -> (i32, i32) {
    %c0_i32 = arith.constant 0 : i32
    %c0_i32_0 = arith.constant 0 : i32
    %c0_i32_1 = arith.constant 0 : i32
    return %c0_i32, %c0_i32_0 : i32, i32
  }
  func.func @transform_2(%arg0: i32, %arg1: i32) -> (i32, i32) {
    %c0_i32 = arith.constant 0 : i32
    %c0_i32_0 = arith.constant 0 : i32
    %c0_i32_1 = arith.constant 0 : i32
    return %c0_i32, %c0_i32_0 : i32, i32
  }
  func.func @transform_3(%arg0: i32, %arg1: i32) -> (i32, i32, i32) {
    %c0_i32 = arith.constant 0 : i32
    %c0_i32_0 = arith.constant 0 : i32
    return %arg0, %c0_i32, %arg1 : i32, i32, i32
  }
}

</mosaic_0001>

<bundles_post_ra>
// kernel: conv_block_forward.3
= control target key start
LH: loop header
LB: loop body
LE: loop exit
PB: predicated region body
PF: predicated region fallthrough
CT: control target
= control target key end

     0   :  { %s413_s12 = smov 0   ;;  %s415_s13 = smov 0   ;;  %s452_s0 = inlined_call_operand.vmem [shape: f32[2,8,512], index: 0, kind: input, shape index: {}]   ;;  %s453_s1 = inlined_call_operand.vmem [shape: f32[8,1], index: 1, kind: input, shape index: {}]   ;;  %s454_s2 = inlined_call_operand.vmem [shape: f32[8,1], index: 2, kind: input, shape index: {}]   ;;  %s455_s3 = inlined_call_operand.vmem [shape: f32[2,8,512], index: 3, kind: output, shape index: {}]  }
   0x1   :  { %s417_s14 = smov 0  }
   0x2 LB: > { %s25_s15 = sadd.s32 1, %s386_s13  ;;  %p333_p0 = scmp.ge.s32.totalorder %s390_s14, 1  ;;  %s390_s14 = sphi %s417_s14, %s13_s14   ;;  %s386_s13 = sphi %s415_s13, %s457_s13   ;;  %s382_s12 = sphi %s413_s12, %s456_s12  }
   0x3   : > { %p27_p1 = scmp.ge.s32.totalorder %s25_s15, 2  ;;  %p158_p2 = scmp.lt.s32.totalorder %s390_s14, 3 }
   0x5   : > { %s459_s15 = smov (%p27_p1, %s25_s15), 0  ;;  %p159_p3 = pnand %p333_p0, %p158_p2 }
   0x6   : > { %p191_p4 = scmp.lt.s32.totalorder (!%p159_p3), %s382_s12, 1 }
   0x7   : > { %162 = sbr.rel (%p159_p3) target bundleno = 148 (0x94), region = 32 }
   0xc   : > { %v214_v0 = vld [vmem:[%s453_s1] sm:$0xff]  ;;  %v392_v1 = vmov 0   ;;  %s461_s12 = smov (!%p191_p4, %s382_s12), 1 }
   0xd   : > { %367 = vset.pattern.permute.xlu0 %v392_v1  ;;  %v224_v2 = vld [vmem:[%s454_s2] sm:$0xff]  ;;  %s340_s20 = sshll.u32 %s461_s12, 5 }
   0xe   : > { %217 = vperm.xlu0 %367, %v214_v0   ;;  %s198_s23 = scalar_lea.vmem %s452_s0, %s340_s20  ;;  %s208_s26 = scalar_lea.vmem %s455_s3, %s340_s20 }
   0xf   : > { %v210_v3 = vld [vmem:[%s198_s23] sm:$0xff]  ;;  %v211_v5 = vld [vmem:[%s198_s23 + $0x8] sm:$0xff]  ;;  %v212_v6 = vld [vmem:[%s198_s23 + $0x10] sm:$0xff] }
  0x10   : > { %v213_v7 = vld [vmem:[%s198_s23 + $0x18] sm:$0xff] }
  0x12   : > { %227 = vperm.xlu0 %367, %v224_v2  }
  0x89   : > { %v218_v4 = vpop.permute.xlu0 %217 }
  0x8a   : > { %v220_v8 = vmul.f32 %v218_v4, %v210_v3  ;;  %v221_v9 = vmul.f32 %v218_v4, %v211_v5  ;;  %v222_v10 = vmul.f32 %v218_v4, %v212_v6  ;;  %v223_v11 = vmul.f32 %v218_v4, %v213_v7 }
  0x8d   : > { %v228_v12 = vpop.permute.xlu0 %227 }
  0x8e   : > { %v230_v13 = vadd.f32 %v228_v12, %v220_v8  ;;  %v231_v14 = vadd.f32 %v228_v12, %v221_v9  ;;  %v232_v15 = vadd.f32 %v228_v12, %v222_v10  ;;  %v233_v16 = vadd.f32 %v228_v12, %v223_v11 }
  0x90   : > { %v234_v17 = vmax.f32 %v230_v13, 0.0  ;;  %v235_v18 = vmax.f32 %v231_v14, 0.0  ;;  %v236_v19 = vmax.f32 %v232_v15, 0.0  ;;  %v237_v20 = vmax.f32 %v233_v16, 0.0 }
  0x92   : > { %238 = vst [vmem:[%s208_s26] sm:$0xff] %v234_v17  ;;  %239 = vst [vmem:[%s208_s26 + $0x8] sm:$0xff] %v235_v18 }
  0x93   : > { %240 = vst [vmem:[%s208_s26 + $0x10] sm:$0xff] %v236_v19  ;;  %241 = vst [vmem:[%s208_s26 + $0x18] sm:$0xff] %v237_v20 }
  0x94 PF: > { %s13_s14 = sadd.s32 1, %s390_s14   ;;  %s456_s12 = smov %s386_s13 }
  0x95   : > { %p10_p5 = scmp.ge.s32.totalorder %s13_s14, 4   ;;  %s457_s13 = smov %s459_s15 }
  0x97   :  { %12 = sbr.rel (!%p10_p5) target bundleno = 2 (0x2), region = 62 }

// kernel: conv_block_forward.2
= control target key start
LH: loop header
LB: loop body
LE: loop exit
PB: predicated region body
PF: predicated region fallthrough
CT: control target
= control target key end

     0   :  { %s758_s15 = smov 0   ;;  %s760_s16 = smov 0   ;;  %s863_s0 = inlined_call_operand.vmem [shape: f32[2,112,512], index: 0, kind: input, shape index: {}]   ;;  %s864_s1 = inlined_call_operand.vmem [shape: f32[8,112], index: 1, kind: input, shape index: {}]   ;;  %s865_s2 = inlined_call_operand.vmem [shape: f32[2,8,512], index: 2, kind: output, shape index: {0}]   ;;  %s866_s3 = inlined_call_operand.vmem [shape: f32[2,1,8,1], index: 3, kind: output, shape index: {1}]   ;;  %s867_s4 = inlined_call_operand.vmem [shape: f32[2,1,8,1], index: 4, kind: output, shape index: {2}]  }
   0x1   :  { %s762_s17 = smov 0  }
   0x2 LB: > { %s27_s18 = sadd.s32 1, %s726_s16  ;;  %p671_p0 = scmp.ge.s32.totalorder %s730_s17, 1  ;;  %s730_s17 = sphi %s762_s17, %s15_s17   ;;  %s726_s16 = sphi %s760_s16, %s869_s16   ;;  %s722_s15 = sphi %s758_s15, %s868_s15  }
   0x3   : > { %p29_p1 = scmp.ge.s32.totalorder %s27_s18, 2  ;;  %p192_p2 = scmp.lt.s32.totalorder %s730_s17, 3 }
   0x5   : > { %s871_s18 = smov (%p29_p1, %s27_s18), 0  ;;  %p193_p3 = pnand %p671_p0, %p192_p2 }
   0x6   : > { %p241_p4 = scmp.lt.s32.totalorder (!%p193_p3), %s722_s15, 1 }
   0x7   : > { %196 = sbr.rel (%p193_p3) target bundleno = 389 (0x185), region = 28 }
   0xc   : > { %v732_v0 = vmov 0.0   ;;  %s873_s15 = smov (!%p241_p4, %s722_s15), 1  ;;  %v330_v56 = vld [vmem:[%s864_s1] sm:$0xff]  ;;  %vm331_vm0 = vcmask 916480   ;;  %vm486_vm1 = vcmask 7168  }
   0xd   : > { %399 = vmatprep.mubr.f32.mxu0 %v732_v0  ;;  %470 = vmatprep.mubr.f32.mxu1 %v732_v0  ;;  %s682_s19 = smul.u32 448, %s873_s15  ;;  %s681_s25 = sshll.u32 %s873_s15, 5 }
   0xe   : > { %s258_s28 = scalar_lea.vmem %s865_s2, %s681_s25  ;;  %s675_s29 = sshll.u32 %s873_s15, 3 }
   0xf   : > { %s782_s22 = scalar_lea.vmem %s863_s0, %s682_s19  ;;  %s266_s6 = scalar_lea.vmem %s866_s3, %s675_s29 }
  0x10   : > { %v327_v1 = vld [vmem:[%s782_s22 + $0x1a8] sm:$0xff]  ;;  %v326_v2 = vld [vmem:[%s782_s22 + $0x1a0] sm:$0xff]  ;;  %v329_v4 = vld [vmem:[%s782_s22 + $0x1b8] sm:$0xff]  ;;  %s273_s9 = scalar_lea.vmem %s867_s4, %s675_s29 }
  0x11   : > { %v323_v3 = vld [vmem:[%s782_s22 + $0x188] sm:$0xff]  ;;  %339 = vmatprep.subr.mxu0 %v327_v1  ;;  %v322_v5 = vld [vmem:[%s782_s22 + $0x180] sm:$0xff]  ;;  %v328_v6 = vld [vmem:[%s782_s22 + $0x1b0] sm:$0xff]  ;;  %410 = vmatprep.subr.mxu1 %v329_v4 }
  0x12   : > { %340 = vmatpush1.msra.mxu0 %v326_v2  ;;  %v319_v7 = vld [vmem:[%s782_s22 + $0x168] sm:$0xff]  ;;  %v325_v8 = vld [vmem:[%s782_s22 + $0x198] sm:$0xff]  ;;  %411 = vmatpush1.msra.mxu1 %v328_v6  ;;  %v318_v9 = vld [vmem:[%s782_s22 + $0x160] sm:$0xff] }
  0x13   : > { %341 = vmatprep.subr.mxu0 %v323_v3  ;;  %v324_v10 = vld [vmem:[%s782_s22 + $0x190] sm:$0xff]  ;;  %v321_v11 = vld [vmem:[%s782_s22 + $0x178] sm:$0xff]  ;;  %412 = vmatprep.subr.mxu1 %v325_v8  ;;  %v315_v12 = vld [vmem:[%s782_s22 + $0x148] sm:$0xff] }
  0x14   : > { %342 = vmatpush1.msra.mxu0 %v322_v5  ;;  %v320_v13 = vld [vmem:[%s782_s22 + $0x170] sm:$0xff]  ;;  %413 = vmatpush1.msra.mxu1 %v324_v10  ;;  %v314_v14 = vld [vmem:[%s782_s22 + $0x140] sm:$0xff]  ;;  %v317_v15 = vld [vmem:[%s782_s22 + $0x158] sm:$0xff] }
  0x15   : > { %343 = vmatprep.subr.mxu0 %v319_v7  ;;  %414 = vmatprep.subr.mxu1 %v321_v11  ;;  %v311_v16 = vld [vmem:[%s782_s22 + $0x128] sm:$0xff]  ;;  %v316_v17 = vld [vmem:[%s782_s22 + $0x150] sm:$0xff]  ;;  %v310_v18 = vld [vmem:[%s782_s22 + $0x120] sm:$0xff] }
  0x16   : > { %344 = vmatpush1.msra.mxu0 %v318_v9  ;;  %415 = vmatpush1.msra.mxu1 %v320_v13  ;;  %v313_v19 = vld [vmem:[%s782_s22 + $0x138] sm:$0xff]  ;;  %v307_v20 = vld [vmem:[%s782_s22 + $0x108] sm:$0xff]  ;;  %v312_v21 = vld [vmem:[%s782_s22 + $0x130] sm:$0xff] }
  0x17   : > { %345 = vmatprep.subr.mxu0 %v315_v12  ;;  %416 = vmatprep.subr.mxu1 %v317_v15  ;;  %v306_v22 = vld [vmem:[%s782_s22 + $0x100] sm:$0xff]  ;;  %v309_v23 = vld [vmem:[%s782_s22 + $0x118] sm:$0xff]  ;;  %v303_v24 = vld [vmem:[%s782_s22 + $0xe8] sm:$0xff] }
  0x18   : > { %346 = vmatpush1.msra.mxu0 %v314_v14  ;;  %417 = vmatpush1.msra.mxu1 %v316_v17  ;;  %v308_v25 = vld [vmem:[%s782_s22 + $0x110] sm:$0xff]  ;;  %v302_v26 = vld [vmem:[%s782_s22 + $0xe0] sm:$0xff]  ;;  %v305_v27 = vld [vmem:[%s782_s22 + $0xf8] sm:$0xff] }
  0x19   : > { %347 = vmatprep.subr.mxu0 %v311_v16  ;;  %418 = vmatprep.subr.mxu1 %v313_v19  ;;  %v299_v28 = vld [vmem:[%s782_s22 + $0xc8] sm:$0xff]  ;;  %v304_v29 = vld [vmem:[%s782_s22 + $0xf0] sm:$0xff]  ;;  %v298_v30 = vld [vmem:[%s782_s22 + $0xc0] sm:$0xff] }
  0x1a   : > { %348 = vmatpush1.msra.mxu0 %v310_v18  ;;  %419 = vmatpush1.msra.mxu1 %v312_v21  ;;  %v301_v31 = vld [vmem:[%s782_s22 + $0xd8] sm:$0xff]  ;;  %v295_v32 = vld [vmem:[%s782_s22 + $0xa8] sm:$0xff]  ;;  %v300_v33 = vld [vmem:[%s782_s22 + $0xd0] sm:$0xff] }
  0x1b   : > { %349 = vmatprep.subr.mxu0 %v307_v20  ;;  %420 = vmatprep.subr.mxu1 %v309_v23  ;;  %v294_v34 = vld [vmem:[%s782_s22 + $0xa0] sm:$0xff]  ;;  %v297_v35 = vld [vmem:[%s782_s22 + $0xb8] sm:$0xff]  ;;  %v291_v36 = vld [vmem:[%s782_s22 + $0x88] sm:$0xff] }
  0x1c   : > { %350 = vmatpush1.msra.mxu0 %v306_v22  ;;  %421 = vmatpush1.msra.mxu1 %v308_v25  ;;  %v296_v37 = vld [vmem:[%s782_s22 + $0xb0] sm:$0xff]  ;;  %v290_v38 = vld [vmem:[%s782_s22 + $0x80] sm:$0xff]  ;;  %v293_v39 = vld [vmem:[%s782_s22 + $0x98] sm:$0xff] }
  0x1d   : > { %351 = vmatprep.subr.mxu0 %v303_v24  ;;  %422 = vmatprep.subr.mxu1 %v305_v27  ;;  %v287_v40 = vld [vmem:[%s782_s22 + $0x68] sm:$0xff]  ;;  %v292_v41 = vld [vmem:[%s782_s22 + $0x90] sm:$0xff]  ;;  %v286_v42 = vld [vmem:[%s782_s22 + $0x60] sm:$0xff] }
  0x1e   : > { %352 = vmatpush1.msra.mxu0 %v302_v26  ;;  %423 = vmatpush1.msra.mxu1 %v304_v29  ;;  %v289_v43 = vld [vmem:[%s782_s22 + $0x78] sm:$0xff]  ;;  %v283_v44 = vld [vmem:[%s782_s22 + $0x48] sm:$0xff]  ;;  %v288_v45 = vld [vmem:[%s782_s22 + $0x70] sm:$0xff] }
  0x1f   : > { %353 = vmatprep.subr.mxu0 %v299_v28  ;;  %424 = vmatprep.subr.mxu1 %v301_v31  ;;  %v282_v46 = vld [vmem:[%s782_s22 + $0x40] sm:$0xff]  ;;  %v285_v47 = vld [vmem:[%s782_s22 + $0x58] sm:$0xff]  ;;  %v279_v48 = vld [vmem:[%s782_s22 + $0x28] sm:$0xff] }
  0x20   : > { %354 = vmatpush1.msra.mxu0 %v298_v30  ;;  %425 = vmatpush1.msra.mxu1 %v300_v33  ;;  %v284_v49 = vld [vmem:[%s782_s22 + $0x50] sm:$0xff]  ;;  %v278_v50 = vld [vmem:[%s782_s22 + $0x20] sm:$0xff]  ;;  %v281_v51 = vld [vmem:[%s782_s22 + $0x38] sm:$0xff] }
  0x21   : > { %355 = vmatprep.subr.mxu0 %v295_v32  ;;  %426 = vmatprep.subr.mxu1 %v297_v35  ;;  %v275_v52 = vld [vmem:[%s782_s22 + $0x8] sm:$0xff]  ;;  %v280_v53 = vld [vmem:[%s782_s22 + $0x30] sm:$0xff]  ;;  %v274_v54 = vld [vmem:[%s782_s22] sm:$0xff] }
  0x22   : > { %356 = vmatpush1.msra.mxu0 %v294_v34  ;;  %427 = vmatpush1.msra.mxu1 %v296_v37  ;;  %v277_v55 = vld [vmem:[%s782_s22 + $0x18] sm:$0xff]  ;;  %v276_v57 = vld [vmem:[%s782_s22 + $0x10] sm:$0xff] }
  0x23   : > { %357 = vmatprep.subr.mxu0 %v291_v36  ;;  %428 = vmatprep.subr.mxu1 %v293_v39 }
  0x24   : > { %358 = vmatpush1.msra.mxu0 %v290_v38  ;;  %429 = vmatpush1.msra.mxu1 %v292_v41 }
  0x25   : > { %359 = vmatprep.subr.mxu0 %v287_v40  ;;  %430 = vmatprep.subr.mxu1 %v289_v43 }
  0x26   : > { %360 = vmatpush1.msra.mxu0 %v286_v42  ;;  %431 = vmatpush1.msra.mxu1 %v288_v45 }
  0x27   : > { %361 = vmatprep.subr.mxu0 %v283_v44  ;;  %432 = vmatprep.subr.mxu1 %v285_v47 }
  0x28   : > { %362 = vmatpush1.msra.mxu0 %v282_v46  ;;  %433 = vmatpush1.msra.mxu1 %v284_v49 }
  0x29   : > { %363 = vmatprep.subr.mxu0 %v279_v48  ;;  %434 = vmatprep.subr.mxu1 %v281_v51 }
  0x2a   : > { %364 = vmatpush1.msra.mxu0 %v278_v50  ;;  %435 = vmatpush1.msra.mxu1 %v280_v53 }
  0x2b   : > { %365 = vmatprep.subr.mxu0 %v275_v52  ;;  %436 = vmatprep.subr.mxu1 %v277_v55 }
  0x2c   : > { %366 = vmatpush1.msra.mxu0 %v274_v54  ;;  %437 = vmatpush1.msra.mxu1 %v276_v57 }
  0x2d   : > { %677 = vmatmul.mubr.msk.f32.vlgmr.msra.gmra.mxu0 %vm331_vm0, %v330_v56  ;;  %678 = vmatmul.mubr.msk.f32.vlgmr.msra.gmra.mxu1 %vm331_vm0, %v330_v56 }
  0xed   : > { %v401_v58 = vpop.f32.mrf.mxu0  ;;  %v472_v59 = vpop.f32.mrf.mxu1 }
  0xee   : > { %477 = vst [vmem:[%s258_s28] sm:$0xff] %v401_v58  ;;  %479 = vst [vmem:[%s258_s28 + $0x10] sm:$0xff] %v472_v59  ;;  %v488_v61 = vmul.f32 %v401_v58, %v401_v58  ;;  %v490_v0 = vmul.f32 %v472_v59, %v472_v59 }
  0xef   : > { %v403_v60 = vpop.f32.mrf.mxu0  ;;  %v474_v1 = vpop.f32.mrf.mxu1 }
  0xf0   : > { %478 = vst [vmem:[%s258_s28 + $0x8] sm:$0xff] %v403_v60  ;;  %v481_v62 = vadd.f32 %v403_v60, %v401_v58  ;;  %v489_v63 = vmul.f32 %v403_v60, %v403_v60  ;;  %480 = vst [vmem:[%s258_s28 + $0x18] sm:$0xff] %v474_v1  ;;  %v491_v6 = vmul.f32 %v474_v1, %v474_v1 }
  0xf2   : > { %v492_v2 = vadd.f32 %v489_v63, %v488_v61  ;;  %v482_v3 = vadd.f32 %v481_v62, %v472_v59 }
  0xf4   : > { %v483_v4 = vadd.f32 %v482_v3, %v474_v1  ;;  %v493_v5 = vadd.f32 %v492_v2, %v490_v0 }
  0xf6   : > { %484 = vadd.xlane.f32.xlu0 %v483_v4  ;;  %v494_v7 = vadd.f32 %v493_v5, %v491_v6 }
  0xfa   : > { %495 = vadd.xlane.f32.xlu0 %v494_v7 }
 0x17f   : > { %v485_v8 = vpop.xlane.xlu0 %484 }
 0x180   : > { %487 = vst.msk [vmem:[%s266_s6] sm:$0xff] %vm486_vm1, %v485_v8 }
 0x183   : > { %v496_v9 = vpop.xlane.xlu0 %495 }
 0x184   : > { %497 = vst.msk [vmem:[%s273_s9] sm:$0xff] %vm486_vm1, %v496_v9 }
 0x185 PF: > { %s15_s17 = sadd.s32 1, %s730_s17   ;;  %s868_s15 = smov %s726_s16 }
 0x186   : > { %p12_p5 = scmp.ge.s32.totalorder %s15_s17, 4   ;;  %s869_s16 = smov %s871_s18 }
 0x188   :  { %14 = sbr.rel (!%p12_p5) target bundleno = 2 (0x2), region = 82 }

</bundles_post_ra>
